<compile_context>
chip_gen: v7x
topology: tpu7x:2x2x1
jax: 0.10.0
libtpu: 0.0.40
codegen_flags: <defaults>
</compile_context>

<pallas_src>
import jax
import jax.numpy as jnp
from jax.experimental import pallas as pl
from jax.experimental.pallas import tpu as pltpu

# ---------------- model dimensions (synthetic, small) ----------------
N_MODELS = 3                 # ensemble size (model1, model2, model3)
B        = 32                # number of drugs in the batch (len(drug-list))
BM       = 16                # drugs per grid step (bf16 sublane-friendly)
L        = 16                # protein token sequence length
VOCAB    = 32                # protein token vocabulary
DP       = 128               # protein descriptor feature dim
DC       = 300               # chem descriptor feature dim (GNN emb_dim=300)
DC_PAD   = 384               # DC padded up to a multiple of 128
K1       = DP + DC_PAD       # fused first-layer contraction dim = 512
H        = 128               # interaction-head hidden dim
H3       = N_MODELS * H      # 384
C        = 2                 # binary DTI logits per model
OUT_PAD  = 128               # lane-dense packed logits width (3*C block-diag)


def ensemble_kernel(x_ref, w1_ref, b1_ref, w2_ref, b2_ref, out_ref):
    """One grid step = BM drugs through all 3 ensemble members, fully fused.

    x_ref   : [BM, K1]      bf16  ( [prot_pooled | chem_pad], shared inputs )
    w1_ref  : [K1, 3H]      bf16  ( [Wp ; Wc] stacked, models concat on N )
    b1_ref  : [1, 3H]       f32
    w2_ref  : [3H, OUT_PAD] bf16  ( block-diagonal: model m at cols 2m..2m+2 )
    b2_ref  : [1, OUT_PAD]  f32
    out_ref : [BM, OUT_PAD] f32   ( lane-dense packed logits )
    """
    # fused first layer across all 3 models: one K=512, N=384 MXU pass
    h = jnp.dot(x_ref[...], w1_ref[...],
                preferred_element_type=jnp.float32)              # [BM, 3H] f32
    h = jnp.maximum(h + b1_ref[...], 0.0)                        # bias + ReLU

    # fused second layer: block-diagonal packed weights, single matmul + store
    logits = jnp.dot(h.astype(jnp.bfloat16), w2_ref[...],
                     preferred_element_type=jnp.float32)         # [BM, OUT_PAD]
    out_ref[...] = logits + b2_ref[...]


def pack_params(params):
    """Checkpoint-load-time packing: stack/concat across models, pad, cast bf16."""
    wp, wc, b1, w2, b2 = params
    # Wp: [3, DP, H] -> [DP, 3H]
    wp_all = jnp.transpose(wp, (1, 0, 2)).reshape(DP, H3)
    # Wc: [3, DC, H] -> pad K to DC_PAD -> [DC_PAD, 3H]
    wc_pad = jnp.pad(wc, ((0, 0), (0, DC_PAD - DC), (0, 0)))
    wc_all = jnp.transpose(wc_pad, (1, 0, 2)).reshape(DC_PAD, H3)
    # fused first-layer weight: [K1=512, 3H], bf16
    w1 = jnp.concatenate([wp_all, wc_all], axis=0).astype(jnp.bfloat16)
    # b1: [3, H] -> [1, 3H]
    b1_all = b1.reshape(1, H3).astype(jnp.float32)
    # W2: block-diagonal [3H, OUT_PAD]; off-diagonal / padding columns are 0
    w2_packed = jnp.zeros((H3, OUT_PAD), jnp.float32)
    b2_packed = jnp.zeros((1, OUT_PAD), jnp.float32)
    for m in range(N_MODELS):
        w2_packed = w2_packed.at[m * H:(m + 1) * H, m * C:(m + 1) * C].set(w2[m])
        b2_packed = b2_packed.at[0, m * C:(m + 1) * C].set(b2[m])
    w2_packed = w2_packed.astype(jnp.bfloat16)
    return w1, b1_all, w2_packed, b2_packed


@jax.jit
def portal_four_universe_ensemble(prot_emb, chem_feat, packed_params):
    """Runs all 3 ensemble members; returns (logits1, logits2, logits3)."""
    w1, b1_all, w2_packed, b2_packed = packed_params

    # protein descriptor: mean-pool over the sequence axis (shared, done once)
    prot_pooled = jnp.mean(prot_emb, axis=1)                      # [B, DP] f32
    # chem features zero-padded 300 -> 384
    chem_pad = jnp.pad(chem_feat, ((0, 0), (0, DC_PAD - DC)))     # [B, DC_PAD]
    # fused activation input, cast to bf16 wrapper-side (half the DMA bytes)
    x = jnp.concatenate([prot_pooled, chem_pad], axis=1).astype(jnp.bfloat16)

    grid = (B // BM,)
    out = pl.pallas_call(
        ensemble_kernel,
        out_shape=jax.ShapeDtypeStruct((B, OUT_PAD), jnp.float32),
        grid=grid,
        in_specs=[
            pl.BlockSpec((BM, K1),       lambda i: (i, 0)),   # x  (per block)
            pl.BlockSpec((K1, H3),       lambda i: (0, 0)),   # W1 (resident)
            pl.BlockSpec((1, H3),        lambda i: (0, 0)),   # b1 (resident)
            pl.BlockSpec((H3, OUT_PAD),  lambda i: (0, 0)),   # W2 (resident)
            pl.BlockSpec((1, OUT_PAD),   lambda i: (0, 0)),   # b2 (resident)
        ],
        out_specs=pl.BlockSpec((BM, OUT_PAD), lambda i: (i, 0)),
        cost_estimate=pl.CostEstimate(flops=16_000_000, transcendentals=0,
                                      bytes_accessed=600_000),
        compiler_params=pltpu.CompilerParams(
            dimension_semantics=("parallel",)),
    )(x, w1, b1_all, w2_packed, b2_packed)

    # unpack the block-diagonal output columns back to per-model [B, 2] logits
    logits1 = out[:, 0 * C:1 * C]
    logits2 = out[:, 1 * C:2 * C]
    logits3 = out[:, 2 * C:3 * C]
    return logits1, logits2, logits3


def make_params(key):
    """Deterministic stand-ins for the 3 loaded checkpoints."""
    ks = jax.random.split(key, 6)
    embed_tbl = jax.random.normal(ks[0], (VOCAB, DP), jnp.float32) * 0.1
    wp = jax.random.normal(ks[1], (N_MODELS, DP, H), jnp.float32) * (1.0 / DP ** 0.5)
    wc = jax.random.normal(ks[2], (N_MODELS, DC, H), jnp.float32) * (1.0 / DC ** 0.5)
    b1 = jax.random.normal(ks[3], (N_MODELS, H), jnp.float32) * 0.01
    w2 = jax.random.normal(ks[4], (N_MODELS, H, C), jnp.float32) * (1.0 / H ** 0.5)
    b2 = jax.random.normal(ks[5], (N_MODELS, C), jnp.float32) * 0.01
    return embed_tbl, (wp, wc, b1, w2, b2)


if __name__ == "__main__":
    key = jax.random.PRNGKey(0)
    k_param, k_prot, k_chem = jax.random.split(key, 3)

    embed_tbl, params = make_params(k_param)
    packed = pack_params(params)            # "load_state_dict"-time packing

    # get_repr_DTI_illum: one protein token sequence, repeated for every drug
    protein_tokens = jax.random.randint(k_prot, (L,), 0, VOCAB)          # [L]
    protein_tokenized = jnp.tile(protein_tokens[None, :], (B, 1))        # [B, L]

    # protein descriptor front-end (embedding lookup, glue in plain JAX)
    prot_emb = embed_tbl[protein_tokenized]                              # [B, L, DP]

    # chem descriptor output (stand-in for the GIN GNN pooled embedding)
    chem_feat = jax.random.normal(k_chem, (B, DC), jnp.float32)          # [B, DC]

    logits1, logits2, logits3 = portal_four_universe_ensemble(
        prot_emb, chem_feat, packed)
    jax.block_until_ready((logits1, logits2, logits3))

    assert logits1.shape == (B, C) and logits2.shape == (B, C) and logits3.shape == (B, C)

    # plain-JAX reference with the same bf16 rounding as the kernel path
    wp, wc, b1, w2, b2 = params
    prot_pooled = jnp.mean(prot_emb, axis=1)
    pm = prot_pooled.astype(jnp.bfloat16).astype(jnp.float32)
    cm = chem_feat.astype(jnp.bfloat16).astype(jnp.float32)
    refs = []
    for m in range(N_MODELS):
        wpm = wp[m].astype(jnp.bfloat16).astype(jnp.float32)
        wcm = wc[m].astype(jnp.bfloat16).astype(jnp.float32)
        w2m = w2[m].astype(jnp.bfloat16).astype(jnp.float32)
        h = jnp.maximum(pm @ wpm + cm @ wcm + b1[m][None, :], 0.0)
        h = h.astype(jnp.bfloat16).astype(jnp.float32)   # kernel feeds bf16 to MXU
        refs.append(h @ w2m + b2[m][None, :])
    ok = (bool(jnp.allclose(logits1, refs[0], rtol=1e-2, atol=1e-2)) and
          bool(jnp.allclose(logits2, refs[1], rtol=1e-2, atol=1e-2)) and
          bool(jnp.allclose(logits3, refs[2], rtol=1e-2, atol=1e-2)))
    assert ok, "Pallas ensemble logits diverge from reference"

    print("KERNEL_OK")
</pallas_src>

<mosaic_0001>
module attributes {stable_mosaic.version = 11 : i64} {
  func.func @ensemble_kernel(%arg0: i32, %arg1: memref<16x512xbf16, #tpu.memory_space<vmem>>, %arg2: memref<512x384xbf16, #tpu.memory_space<vmem>>, %arg3: memref<1x384xf32, #tpu.memory_space<vmem>>, %arg4: memref<384x128xbf16, #tpu.memory_space<vmem>>, %arg5: memref<1x128xf32, #tpu.memory_space<vmem>>, %arg6: memref<16x128xf32, #tpu.memory_space<vmem>>) attributes {dimension_semantics = [#tpu.dimension_semantics<parallel>], iteration_bounds = array<i64: 2>, scalar_prefetch = 0 : i64, scratch_operands = 0 : i64, tpu.core_type = #tpu.core_type<tc>, window_params = [{transform_indices = @transform_0, window_bounds = array<i64: 16, 512>}, {pipeline_mode = #tpu.pipeline_mode<synchronous>, transform_indices = @transform_1, window_bounds = array<i64: 512, 384>}, {pipeline_mode = #tpu.pipeline_mode<synchronous>, transform_indices = @transform_2, window_bounds = array<i64: 1, 384>}, {pipeline_mode = #tpu.pipeline_mode<synchronous>, transform_indices = @transform_3, window_bounds = array<i64: 384, 128>}, {pipeline_mode = #tpu.pipeline_mode<synchronous>, transform_indices = @transform_4, window_bounds = array<i64: 1, 128>}, {transform_indices = @transform_5, window_bounds = array<i64: 16, 128>}]} {
    %c0 = arith.constant 0 : index
    %c0_0 = arith.constant 0 : index
    %0 = vector.load %arg1[%c0, %c0_0] : memref<16x512xbf16, #tpu.memory_space<vmem>>, vector<16x512xbf16>
    %c0_1 = arith.constant 0 : index
    %c0_2 = arith.constant 0 : index
    %1 = vector.load %arg2[%c0_1, %c0_2] : memref<512x384xbf16, #tpu.memory_space<vmem>>, vector<512x384xbf16>
    %cst = arith.constant dense<0.000000e+00> : vector<16x384xf32>
    %2 = tpu.matmul %0, %1, %cst {dimension_numbers = #tpu.dot_dimension_numbers<[1], [0], [0], [1], [0, 0, 1, 1], [], []>} : vector<16x512xbf16>, vector<512x384xbf16>, vector<16x384xf32> -> vector<16x384xf32>
    %c0_3 = arith.constant 0 : index
    %c0_4 = arith.constant 0 : index
    %3 = vector.load %arg3[%c0_3, %c0_4] : memref<1x384xf32, #tpu.memory_space<vmem>>, vector<1x384xf32>
    %4 = vector.broadcast %3 : vector<1x384xf32> to vector<16x384xf32>
    %5 = arith.addf %2, %4 : vector<16x384xf32>
    %cst_5 = arith.constant 0.000000e+00 : f32
    %6 = vector.broadcast %cst_5 : f32 to vector<16x384xf32>
    %7 = arith.maximumf %5, %6 : vector<16x384xf32>
    %8 = arith.truncf %7 : vector<16x384xf32> to vector<16x384xbf16>
    %c0_6 = arith.constant 0 : index
    %c0_7 = arith.constant 0 : index
    %9 = vector.load %arg4[%c0_6, %c0_7] : memref<384x128xbf16, #tpu.memory_space<vmem>>, vector<384x128xbf16>
    %cst_8 = arith.constant dense<0.000000e+00> : vector<16x128xf32>
    %10 = tpu.matmul %8, %9, %cst_8 {dimension_numbers = #tpu.dot_dimension_numbers<[1], [0], [0], [1], [0, 0, 1, 1], [], []>} : vector<16x384xbf16>, vector<384x128xbf16>, vector<16x128xf32> -> vector<16x128xf32>
    %c0_9 = arith.constant 0 : index
    %c0_10 = arith.constant 0 : index
    %11 = vector.load %arg5[%c0_9, %c0_10] : memref<1x128xf32, #tpu.memory_space<vmem>>, vector<1x128xf32>
    %12 = vector.broadcast %11 : vector<1x128xf32> to vector<16x128xf32>
    %13 = arith.addf %10, %12 : vector<16x128xf32>
    %c0_11 = arith.constant 0 : index
    %c0_12 = arith.constant 0 : index
    %14 = vector.load %arg6[%c0_11, %c0_12] : memref<16x128xf32, #tpu.memory_space<vmem>>, vector<16x128xf32>
    tpu.vector_store %arg6[%c0_11, %c0_12], %13 {strides = array<i32>} : memref<16x128xf32, #tpu.memory_space<vmem>>, vector<16x128xf32>,
    return
  }
  func.func @transform_0(%arg0: i32) -> (i32, i32) {
    %c0_i32 = arith.constant 0 : i32
    %c0_i32_0 = arith.constant 0 : i32
    return %arg0, %c0_i32 : i32, i32
  }
  func.func @transform_1(%arg0: i32) -> (i32, i32) {
    %c0_i32 = arith.constant 0 : i32
    %c0_i32_0 = arith.constant 0 : i32
    %c0_i32_1 = arith.constant 0 : i32
    return %c0_i32, %c0_i32_0 : i32, i32
  }
  func.func @transform_2(%arg0: i32) -> (i32, i32) {
    %c0_i32 = arith.constant 0 : i32
    %c0_i32_0 = arith.constant 0 : i32
    %c0_i32_1 = arith.constant 0 : i32
    return %c0_i32, %c0_i32_0 : i32, i32
  }
  func.func @transform_3(%arg0: i32) -> (i32, i32) {
    %c0_i32 = arith.constant 0 : i32
    %c0_i32_0 = arith.constant 0 : i32
    %c0_i32_1 = arith.constant 0 : i32
    return %c0_i32, %c0_i32_0 : i32, i32
  }
  func.func @transform_4(%arg0: i32) -> (i32, i32) {
    %c0_i32 = arith.constant 0 : i32
    %c0_i32_0 = arith.constant 0 : i32
    %c0_i32_1 = arith.constant 0 : i32
    return %c0_i32, %c0_i32_0 : i32, i32
  }
  func.func @transform_5(%arg0: i32) -> (i32, i32) {
    %c0_i32 = arith.constant 0 : i32
    %c0_i32_0 = arith.constant 0 : i32
    return %arg0, %c0_i32 : i32, i32
  }
}

</mosaic_0001>

<bundles_post_ra>
// kernel: portal_four_universe_ensemble.1
= control target key start
LH: loop header
LB: loop body
LE: loop exit
PB: predicated region body
PF: predicated region fallthrough
CT: control target
= control target key end

     0   :  { %10 = vsyncpa [#allocation3], 0  ;;  %s1955_s18 = smov 0   ;;  %s2327_s0 = inlined_call_operand.vmem [shape: bf16[32,512], index: 0, kind: input, shape index: {}]   ;;  %s2328_s1 = inlined_call_operand.vmem [shape: bf16[512,384], index: 1, kind: input, shape index: {}]   ;;  %s2329_s2 = inlined_call_operand.vmem [shape: f32[1,384], index: 2, kind: input, shape index: {}]   ;;  %s2330_s3 = inlined_call_operand.hbm [shape: bf16[384,128], index: 3, kind: input, shape index: {}]   ;;  %s2331_s4 = inlined_call_operand.vmem [shape: f32[1,128], index: 4, kind: input, shape index: {}]   ;;  %s2332_s5 = inlined_call_operand.vmem [shape: f32[32,128], index: 5, kind: output, shape index: {}]  }
   0x1 LB: > { %s1456_s19 = sadd.s32 4294967295, %s1918_s18   ;;  %p1458_p0 = scmp.ge.s32.totalorder %s1918_s18, 1  ;;  %s1918_s18 = sphi %s1955_s18, %s16_s18  }
   0x2   : > { %p157_p1 = scmp.lt.s32.totalorder %s1918_s18, 3  ;;  %s1920_s20 = smov [#allocation2]  }
   0x3   : > { %s175_s21 = sshll.u32 %s1920_s20, 4  ;;  %p1969_p3 = scmp.eq.s32.totalorder %s1456_s19, 0  ;;  %s176_s21 = int_to_ptr.vmem [resolvable:$true] %s175_s21 }
   0x4   : > { %p1963_p2 = pnand %p1458_p0, %p157_p1  ;;  %s1880_s27 = scalar_lea.hbm %s2330_s3, 3072 }
   0x5   : > { %s2337_s23 = scalar_select %p1969_p3, 1, 0 }
   0x6   : > { %s2336_s22 = scalar_select %p1963_p2, 1, 0 }
   0x7   : > { %p1703_p4 = pneg %p1963_p2  ;;  %p1881_p6 = scmp.ne.s32.totalorder %s2330_s3, %s1880_s27 }
   0x8   : > { %p1887_p10 = scmp.lt.u32.totalorder %s1880_s27, %s2330_s3 }
   0x9   : > { %p1977_p5 = pnand %p1969_p3, %p1703_p4 }
   0xb   : > { %p1882_p7 = pneg %p1977_p5 }
   0xd   : > { %p1883_p8 = pnand %p1882_p7, %p1881_p6 }
   0xf   : > { %p1884_p9 = pneg %p1883_p8 }
  0x11   : > { %p1889_p11 = pnand %p1887_p10, %p1884_p9 }
  0x13   : > { %1892 = shalt.err (!%p1889_p11)
}
  0x14   : > { %s1893_s7 = scalar_lea.vmem %s176_s21, 3072  ;;  %p1901_p1 = scmp.lt.s32.totalorder %s176_s21, %s176_s21 }
  0x15   : > { %p1894_p12 = scmp.ne.s32.totalorder %s176_s21, %s1893_s7  ;;  %p1902_p4 = scmp.lt.s32.totalorder %s1893_s7, %s1893_s7 }
  0x17   : > { %p1896_p13 = pnand %p1894_p12, %p1882_p7  ;;  %p1903_p3 = por %p1902_p4, %p1901_p1 }
  0x19   : > { %p1897_p0 = pneg %p1896_p13 }
  0x1b   : > { %p1904_p2 = pnand %p1903_p3, %p1897_p0 }
  0x1d   : > { %1907 = shalt.err (!%p1904_p2)
}
  0x1e   : > { %s1921_s8 = smov 64   ;;  %s1922_s9 = smov 4  }
  0x1f   : > { %1706 = dma.hbm_to_vmem [thread:$0]  (!%p1977_p5), %s2330_s3, 3072, %s176_s21, [#allocation3], %s1921_s8, %s1921_s8, %s1922_s9  }
  0x20   : > { %p2339_p6 = scmp.ne.s32.totalorder %s2336_s22, 0 }
  0x21   : > { %p2340_p8 = scmp.ne.s32.totalorder (!%p2339_p6), %s2337_s23, 0 }
  0x22   : > { %204 = sbr.rel (%p2339_p6) target bundleno = 642 (0x282), region = 40 }
  0x29   : > { %1913 = dma.done.wait (%p2340_p8), [#allocation3], 3072  }
  0x2a   : > { %1915 = vsyncadd (%p2340_p8), [#allocation3], 4294964224  ;;  %v1722_v0 = vld [vmem:[%s2328_s1 + $0x4] ss:$12 sps:$4 sm:$0xff]   ;;  %v1724_v1 = vld [vmem:[%s2328_s1] ss:$12 sps:$4 sm:$0xff]  }
  0x2b   : > { %928 = vmatprep.subr.bf16.mxu0 %v1722_v0  ;;  %v1725_v2 = vld [vmem:[%s2328_s1 + $0x1c] ss:$12 sps:$4 sm:$0xff]   ;;  %v1727_v3 = vld [vmem:[%s2328_s1 + $0x18] ss:$12 sps:$4 sm:$0xff]   ;;  %v1728_v4 = vld [vmem:[%s2328_s1 + $0x34] ss:$12 sps:$4 sm:$0xff]  }
  0x2c   : > { %929 = vmatpush1.bf16.msra.mxu0 %v1724_v1  ;;  %v1730_v5 = vld [vmem:[%s2328_s1 + $0x30] ss:$12 sps:$4 sm:$0xff]   ;;  %s1463_s26 = sshll.u32 %s1456_s19, 1  ;;  %v1731_v6 = vld [vmem:[%s2328_s1 + $0x4c] ss:$12 sps:$4 sm:$0xff]   ;;  %vm1924_vm0 = vmmov 0  }
  0x2d   : > { %930 = vmatprep.subr.bf16.mxu0 %v1725_v2  ;;  %p234_p2 = scmp.lt.s32.totalorder %s1463_s26, 3  ;;  %v1733_v7 = vld [vmem:[%s2328_s1 + $0x48] ss:$12 sps:$4 sm:$0xff]   ;;  %v1734_v8 = vld [vmem:[%s2328_s1 + $0x64] ss:$12 sps:$4 sm:$0xff]  }
  0x2e   : > { %v1736_v9 = vld [vmem:[%s2328_s1 + $0x60] ss:$12 sps:$4 sm:$0xff]   ;;  %v1737_v10 = vld [vmem:[%s2328_s1 + $0x7c] ss:$12 sps:$4 sm:$0xff]   ;;  %v1739_v11 = vld [vmem:[%s2328_s1 + $0x78] ss:$12 sps:$4 sm:$0xff]  }
  0x2f   : > { %s2342_s26 = smov (!%p234_p2, %s1463_s26), 3  ;;  %v1740_v12 = vld [vmem:[%s2328_s1 + $0x94] ss:$12 sps:$4 sm:$0xff]   ;;  %v1742_v13 = vld [vmem:[%s2328_s1 + $0x90] ss:$12 sps:$4 sm:$0xff]  }
  0x30   : > { %931 = vmatpush1.bf16.msra.mxu0 %v1727_v3  ;;  %s1595_s11 = sshll.u32 %s2342_s26, 4  ;;  %v1770_v14 = vld [vmem:[%s2328_s1 + $0xc8] ss:$12 sps:$4 sm:$0xff]   ;;  %v1743_v16 = vld [vmem:[%s2328_s1 + $0xac] ss:$12 sps:$4 sm:$0xff]   ;;  %s1467_s10 = sshll.u32 %s2342_s26, 3 }
  0x31   : > { %932 = vmatprep.subr.bf16.mxu0 %v1728_v4  ;;  %s2053_s22 = scalar_lea.vmem %s2327_s0, %s1595_s11  ;;  %v1771_v15 = vld [vmem:[%s2328_s1 + $0x8] ss:$12 sps:$4 sm:$0xff]   ;;  %1596 = vmatprep.subr.bf16.mxu1 %v1770_v14  ;;  %v1778_v19 = vld [vmem:[%s2328_s1 + $0xe0] ss:$12 sps:$4 sm:$0xff]   ;;  %v1746_v21 = vld [vmem:[%s2328_s1 + $0xc4] ss:$12 sps:$4 sm:$0xff]   ;;  %s244_s13 = scalar_lea.vmem %s2332_s5, %s1467_s10 }
  0x32   : > { %v1774_v17 = vld [vmem:[%s2053_s22 + $0x4] ss:$16 sps:$4 sm:$0xff]   ;;  %1597 = vmatpush3.bf16.msra.mxu1 %v1771_v15  ;;  %v1779_v20 = vld [vmem:[%s2328_s1 + $0x20] ss:$12 sps:$4 sm:$0xff]   ;;  %v1749_v25 = vld [vmem:[%s2328_s1 + $0xdc] ss:$12 sps:$4 sm:$0xff]  }
  0x33   : > { %v1745_v18 = vld [vmem:[%s2328_s1 + $0xa8] ss:$12 sps:$4 sm:$0xff]   ;;  %960 = vmatprep.mubr.bf16.mxu0 %v1774_v17  ;;  %1046 = vmatprep.mubr.bf16.mxu1 %v1774_v17  ;;  %v1748_v22 = vld [vmem:[%s2328_s1 + $0xc0] ss:$12 sps:$4 sm:$0xff]   ;;  %v1783_v23 = vld [vmem:[%s2328_s1 + $0xf8] ss:$12 sps:$4 sm:$0xff]  }
  0x34   : > { %933 = vmatpush1.bf16.msra.mxu0 %v1730_v5  ;;  %1598 = vmatprep.subr.bf16.mxu1 %v1778_v19  ;;  %v1784_v24 = vld [vmem:[%s2328_s1 + $0x38] ss:$12 sps:$4 sm:$0xff]   ;;  %v1788_v26 = vld [vmem:[%s2328_s1 + $0x110] ss:$12 sps:$4 sm:$0xff]   ;;  %v1752_v29 = vld [vmem:[%s2328_s1 + $0xf4] ss:$12 sps:$4 sm:$0xff]  }
  0x35   : > { %934 = vmatprep.subr.bf16.mxu0 %v1731_v6  ;;  %v1789_v27 = vld [vmem:[%s2328_s1 + $0x50] ss:$12 sps:$4 sm:$0xff]   ;;  %v1751_v28 = vld [vmem:[%s2328_s1 + $0xd8] ss:$12 sps:$4 sm:$0xff]   ;;  %v1793_v30 = vld [vmem:[%s2328_s1 + $0x128] ss:$12 sps:$4 sm:$0xff]  }
  0x36   : > { %1599 = vmatpush3.bf16.msra.mxu1 %v1779_v20  ;;  %v1794_v31 = vld [vmem:[%s2328_s1 + $0x68] ss:$12 sps:$4 sm:$0xff]   ;;  %v1754_v32 = vld [vmem:[%s2328_s1 + $0xf0] ss:$12 sps:$4 sm:$0xff]   ;;  %v1755_v33 = vld [vmem:[%s2328_s1 + $0x10c] ss:$12 sps:$4 sm:$0xff]  }
  0x37   : > { %1600 = vmatprep.subr.bf16.mxu1 %v1783_v23  ;;  %v1798_v34 = vld [vmem:[%s2328_s1 + $0x140] ss:$12 sps:$4 sm:$0xff]   ;;  %v1757_v36 = vld [vmem:[%s2328_s1 + $0x108] ss:$12 sps:$4 sm:$0xff]   ;;  %v1803_v37 = vld [vmem:[%s2328_s1 + $0x158] ss:$12 sps:$4 sm:$0xff]  }
  0x38   : > { %935 = vmatpush1.bf16.msra.mxu0 %v1733_v7  ;;  %v1799_v35 = vld [vmem:[%s2328_s1 + $0x80] ss:$12 sps:$4 sm:$0xff]   ;;  %v1758_v38 = vld [vmem:[%s2328_s1 + $0x124] ss:$12 sps:$4 sm:$0xff]   ;;  %v1761_v42 = vld [vmem:[%s2328_s1 + $0x13c] ss:$12 sps:$4 sm:$0xff]  }
  0x39   : > { %936 = vmatprep.subr.bf16.mxu0 %v1734_v8  ;;  %v1804_v39 = vld [vmem:[%s2328_s1 + $0x98] ss:$12 sps:$4 sm:$0xff]   ;;  %v1808_v40 = vld [vmem:[%s2328_s1 + $0x170] ss:$12 sps:$4 sm:$0xff]   ;;  %v1760_v41 = vld [vmem:[%s2328_s1 + $0x120] ss:$12 sps:$4 sm:$0xff]  }
  0x3a   : > { %1601 = vmatpush3.bf16.msra.mxu1 %v1784_v24  ;;  %v1809_v43 = vld [vmem:[%s2328_s1 + $0xb0] ss:$12 sps:$4 sm:$0xff]   ;;  %v1813_v44 = vld [vmem:[%s2328_s1 + $0x248] ss:$12 sps:$4 sm:$0xff]   ;;  %v1763_v45 = vld [vmem:[%s2328_s1 + $0x138] ss:$12 sps:$4 sm:$0xff]  }
  0x3b   : > { %1602 = vmatprep.subr.bf16.mxu1 %v1788_v26  ;;  %v1764_v46 = vld [vmem:[%s2328_s1 + $0x154] ss:$12 sps:$4 sm:$0xff]   ;;  %v1766_v50 = vld [vmem:[%s2328_s1 + $0x150] ss:$12 sps:$4 sm:$0xff]   ;;  %v1767_v51 = vld [vmem:[%s2328_s1 + $0x16c] ss:$12 sps:$4 sm:$0xff]  }
  0x3c   : > { %937 = vmatpush1.bf16.msra.mxu0 %v1736_v9  ;;  %v1772_v47 = vld [vmem:[%s2053_s22] ss:$16 sps:$4 sm:$0xff]   ;;  %v1814_v48 = vld [vmem:[%s2328_s1 + $0x188] ss:$12 sps:$4 sm:$0xff]   ;;  %v1823_v53 = vld [vmem:[%s2328_s1 + $0x278] ss:$12 sps:$4 sm:$0xff]  }
  0x3d   : > { %938 = vmatprep.subr.bf16.mxu0 %v1737_v10  ;;  %v1818_v49 = vld [vmem:[%s2328_s1 + $0x260] ss:$12 sps:$4 sm:$0xff]   ;;  %v1769_v54 = vld [vmem:[%s2328_s1 + $0x168] ss:$12 sps:$4 sm:$0xff]   ;;  %v1777_v55 = vld [vmem:[%s2328_s1 + $0x184] ss:$12 sps:$4 sm:$0xff]  }
  0x3e   : > { %1603 = vmatpush3.bf16.msra.mxu1 %v1789_v27  ;;  %v1819_v52 = vld [vmem:[%s2328_s1 + $0x1a0] ss:$12 sps:$4 sm:$0xff]   ;;  %v1824_v56 = vld [vmem:[%s2328_s1 + $0x1b8] ss:$12 sps:$4 sm:$0xff]   ;;  %v1828_v57 = vld [vmem:[%s2328_s1 + $0x290] ss:$12 sps:$4 sm:$0xff]  }
  0x3f   : > { %1604 = vmatprep.subr.bf16.mxu1 %v1793_v30  ;;  %v1775_v58 = vld [vmem:[%s2328_s1 + $0x180] ss:$12 sps:$4 sm:$0xff]   ;;  %v1782_v59 = vld [vmem:[%s2328_s1 + $0x19c] ss:$12 sps:$4 sm:$0xff]   ;;  %v1780_v62 = vld [vmem:[%s2328_s1 + $0x198] ss:$12 sps:$4 sm:$0xff]  }
  0x40   : > { %939 = vmatpush1.bf16.msra.mxu0 %v1739_v11  ;;  %v1829_v60 = vld [vmem:[%s2328_s1 + $0x1d0] ss:$12 sps:$4 sm:$0xff]   ;;  %v1833_v61 = vld [vmem:[%s2328_s1 + $0x2a8] ss:$12 sps:$4 sm:$0xff]   ;;  %v1838_v1 = vld [vmem:[%s2328_s1 + $0x2c0] ss:$12 sps:$4 sm:$0xff]  }
  0x41   : > { %940 = vmatprep.subr.bf16.mxu0 %v1740_v12  ;;  %v1787_v63 = vld [vmem:[%s2328_s1 + $0x1b4] ss:$12 sps:$4 sm:$0xff]   ;;  %v1785_v2 = vld [vmem:[%s2328_s1 + $0x1b0] ss:$12 sps:$4 sm:$0xff]   ;;  %v1792_v3 = vld [vmem:[%s2328_s1 + $0x1cc] ss:$12 sps:$4 sm:$0xff]  }
  0x42   : > { %1605 = vmatpush3.bf16.msra.mxu1 %v1794_v31  ;;  %v1834_v0 = vld [vmem:[%s2328_s1 + $0x1e8] ss:$12 sps:$4 sm:$0xff]   ;;  %v1839_v4 = vld [vmem:[%s2328_s1 + $0x200] ss:$12 sps:$4 sm:$0xff]   ;;  %v1843_v5 = vld [vmem:[%s2328_s1 + $0x2d8] ss:$12 sps:$4 sm:$0xff]  }
  0x43   : > { %1606 = vmatprep.subr.bf16.mxu1 %v1798_v34  ;;  %v1790_v6 = vld [vmem:[%s2328_s1 + $0x1c8] ss:$12 sps:$4 sm:$0xff]   ;;  %v1797_v7 = vld [vmem:[%s2328_s1 + $0x1e4] ss:$12 sps:$4 sm:$0xff]   ;;  %v1855_v9 = vld [vmem:[%s2053_s22 + $0xc] ss:$16 sps:$4 sm:$0xff]  }
  0x44   : > { %941 = vmatpush1.bf16.msra.mxu0 %v1742_v13  ;;  %v1844_v8 = vld [vmem:[%s2328_s1 + $0x218] ss:$12 sps:$4 sm:$0xff]   ;;  %v1848_v10 = vld [vmem:[%s2328_s1 + $0x2f0] ss:$12 sps:$4 sm:$0xff]   ;;  %v1795_v11 = vld [vmem:[%s2328_s1 + $0x1e0] ss:$12 sps:$4 sm:$0xff]  }
  0x45   : > { %942 = vmatprep.subr.bf16.mxu0 %v1743_v16  ;;  %v1802_v12 = vld [vmem:[%s2328_s1 + $0x1fc] ss:$12 sps:$4 sm:$0xff]   ;;  %v1800_v13 = vld [vmem:[%s2328_s1 + $0x1f8] ss:$12 sps:$4 sm:$0xff]   ;;  %v1807_v15 = vld [vmem:[%s2328_s1 + $0x214] ss:$12 sps:$4 sm:$0xff]  }
  0x46   : > { %1607 = vmatpush3.bf16.msra.mxu1 %v1799_v35  ;;  %v1849_v14 = vld [vmem:[%s2328_s1 + $0x230] ss:$12 sps:$4 sm:$0xff]   ;;  %v1856_v16 = vld [vmem:[#allocation2 + $0x40] sm:$0xff]   ;;  %v1853_v17 = vld [vmem:[%s2053_s22 + $0x8] ss:$16 sps:$4 sm:$0xff]  }
  0x47   : > { %1608 = vmatprep.subr.bf16.mxu1 %v1803_v37  ;;  %v1805_v19 = vld [vmem:[%s2328_s1 + $0x210] ss:$12 sps:$4 sm:$0xff]   ;;  %v1858_v20 = vld [vmem:[#allocation2 + $0x48] sm:$0xff]   ;;  %v1820_v31 = vld [vmem:[%s2328_s1 + $0x258] ss:$12 sps:$4 sm:$0xff]  }
  0x48   : > { %943 = vmatpush1.bf16.msra.mxu0 %v1745_v18  ;;  %v1857_v18 = vld [vmem:[#allocation2] sm:$0xff]   ;;  %v1860_v23 = vld [vmem:[#allocation2 + $0x50] sm:$0xff]   ;;  %v1862_v27 = vld [vmem:[#allocation2 + $0x58] sm:$0xff]  }
  0x49   : > { %944 = vmatprep.subr.bf16.mxu0 %v1746_v21  ;;  %v1812_v21 = vld [vmem:[%s2328_s1 + $0x22c] ss:$12 sps:$4 sm:$0xff]   ;;  %v1810_v24 = vld [vmem:[%s2328_s1 + $0x228] ss:$12 sps:$4 sm:$0xff]  }
  0x4a   : > { %1609 = vmatpush3.bf16.msra.mxu1 %v1804_v39  ;;  %v1861_v26 = vld [vmem:[#allocation2 + $0x10] sm:$0xff]   ;;  %v1863_v30 = vld [vmem:[#allocation2 + $0x18] sm:$0xff]   ;;  %v1835_v37 = vld [vmem:[%s2328_s1 + $0x2a0] ss:$12 sps:$4 sm:$0xff]  }
  0x4b   : > { %1610 = vmatprep.subr.bf16.mxu1 %v1808_v40  ;;  %v1832_v34 = vld [vmem:[%s2328_s1 + $0x28c] ss:$12 sps:$4 sm:$0xff]   ;;  %v1830_v35 = vld [vmem:[%s2328_s1 + $0x288] ss:$12 sps:$4 sm:$0xff]  }
  0x4c   : > { %945 = vmatpush1.bf16.msra.mxu0 %v1748_v22  ;;  %v1859_v22 = vld [vmem:[#allocation2 + $0x8] sm:$0xff]   ;;  %v1840_v39 = vld [vmem:[%s2328_s1 + $0x2b8] ss:$12 sps:$4 sm:$0xff]   ;;  %v1847_v40 = vld [vmem:[%s2328_s1 + $0x2d4] ss:$12 sps:$4 sm:$0xff]  }
  0x4d   : > { %946 = vmatprep.subr.bf16.mxu0 %v1749_v25  ;;  %v1817_v25 = vld [vmem:[%s2328_s1 + $0x244] ss:$12 sps:$4 sm:$0xff]  }
  0x4e   : > { %1611 = vmatpush3.bf16.msra.mxu1 %v1809_v43  ;;  %v1850_v43 = vld [vmem:[%s2328_s1 + $0x2e8] ss:$12 sps:$4 sm:$0xff]  }
  0x4f   : > { %1618 = vmatprep.subr.bf16.mxu1 %v1813_v44  ;;  %v1864_v44 = vld [vmem:[#allocation2 + $0x60] sm:$0xff]  }
  0x50   : > { %947 = vmatpush1.bf16.msra.mxu0 %v1751_v28  ;;  %v1815_v28 = vld [vmem:[%s2328_s1 + $0x240] ss:$12 sps:$4 sm:$0xff]  }
  0x51   : > { %948 = vmatprep.subr.bf16.mxu0 %v1752_v29  ;;  %1047 = vmatmul.mubr.bf16.vlgmr.msra.gmra.mrb[0].mxu1 %v1772_v47  ;;  %v1822_v29 = vld [vmem:[%s2328_s1 + $0x25c] ss:$12 sps:$4 sm:$0xff]  }
  0x52   : > { %1619 = vmatpush3.bf16.msra.mxu1 %v1814_v48  ;;  %1087 = vmatprep.mubr.bf16.mxu1 %v1855_v9  ;;  %v1868_v48 = vld [vmem:[#allocation2 + $0x70] sm:$0xff]  }
  0x53   : > { %1620 = vmatprep.subr.bf16.mxu1 %v1818_v49  ;;  %v1869_v49 = vld [vmem:[#allocation2 + $0x30] sm:$0xff]  }
  0x54   : > { %949 = vmatpush1.bf16.msra.mxu0 %v1754_v32  ;;  %v1827_v32 = vld [vmem:[%s2328_s1 + $0x274] ss:$12 sps:$4 sm:$0xff]  }
  0x55   : > { %950 = vmatprep.subr.bf16.mxu0 %v1755_v33  ;;  %v1825_v33 = vld [vmem:[%s2328_s1 + $0x270] ss:$12 sps:$4 sm:$0xff]  }
  0x56   : > { %1621 = vmatpush3.bf16.msra.mxu1 %v1819_v52  ;;  %v1923_v52 = vmov 0.0  }
  0x57   : > { %1622 = vmatprep.subr.bf16.mxu1 %v1823_v53 }
  0x58   : > { %951 = vmatpush1.bf16.msra.mxu0 %v1757_v36  ;;  %v1837_v36 = vld [vmem:[%s2328_s1 + $0x2a4] ss:$12 sps:$4 sm:$0xff]  }
  0x59   : > { %952 = vmatprep.subr.bf16.mxu0 %v1758_v38  ;;  %v1842_v38 = vld [vmem:[%s2328_s1 + $0x2bc] ss:$12 sps:$4 sm:$0xff]  }
  0x5a   : > { %1623 = vmatpush3.bf16.msra.mxu1 %v1824_v56 }
  0x5b   : > { %1624 = vmatprep.subr.bf16.mxu1 %v1828_v57 }
  0x5c   : > { %953 = vmatpush1.bf16.msra.mxu0 %v1760_v41  ;;  %v1845_v41 = vld [vmem:[%s2328_s1 + $0x2d0] ss:$12 sps:$4 sm:$0xff]  }
  0x5d   : > { %954 = vmatprep.subr.bf16.mxu0 %v1761_v42  ;;  %v1852_v42 = vld [vmem:[%s2328_s1 + $0x2ec] ss:$12 sps:$4 sm:$0xff]  }
  0x5e   : > { %1625 = vmatpush3.bf16.msra.mxu1 %v1829_v60 }
  0x5f   : > { %1626 = vmatprep.subr.bf16.mxu1 %v1833_v61 }
  0x60   : > { %955 = vmatpush1.bf16.msra.mxu0 %v1763_v45  ;;  %v1865_v45 = vld [vmem:[#allocation2 + $0x20] sm:$0xff]  }
  0x61   : > { %956 = vmatprep.subr.bf16.mxu0 %v1764_v46  ;;  %v1866_v46 = vld [vmem:[#allocation2 + $0x68] sm:$0xff]  }
  0x62   : > { %1627 = vmatpush3.bf16.msra.mxu1 %v1834_v0 }
  0x63   : > { %1628 = vmatprep.subr.bf16.mxu1 %v1838_v1 }
  0x64   : > { %957 = vmatpush1.bf16.msra.mxu0 %v1766_v50  ;;  %v1870_v50 = vld [vmem:[#allocation2 + $0x78] sm:$0xff]  }
  0x65   : > { %958 = vmatprep.subr.bf16.mxu0 %v1767_v51  ;;  %v1871_v51 = vld [vmem:[#allocation2 + $0x38] sm:$0xff]  }
  0x66   : > { %1629 = vmatpush3.bf16.msra.mxu1 %v1839_v4 }
  0x67   : > { %1630 = vmatprep.subr.bf16.mxu1 %v1843_v5 }
  0x68   : > { %959 = vmatpush1.bf16.msra.mxu0 %v1769_v54 }
  0x69   : > { %971 = vmatprep.subr.bf16.mxu0 %v1777_v55 }
  0x6a   : > { %1631 = vmatpush3.bf16.msra.mxu1 %v1844_v8 }
  0x6b   : > { %961 = vmatmul.mubr.bf16.vlgmr.msra.gmra.mrb[0].mxu0 %v1772_v47  ;;  %1632 = vmatprep.subr.bf16.mxu1 %v1848_v10  ;;  %v1867_v47 = vld [vmem:[#allocation2 + $0x28] sm:$0xff]  }
  0x6c   : > { %972 = vmatpush1.bf16.msra.mxu0 %v1775_v58  ;;  %1003 = vmatprep.mubr.bf16.mxu0 %v1855_v9 }
  0x6d   : > { %973 = vmatprep.subr.bf16.mxu0 %v1782_v59  ;;  %v381_v59 = vlaneseq }
  0x6e   : > { %1633 = vmatpush3.bf16.msra.mxu1 %v1849_v14 }
  0x6f   : > { %1640 = vmatprep.subr.bf16.mxu1 %v1856_v16  ;;  %v382_v60 = vshrl.u32 %v381_v59, 7 }
  0x70   : > { %974 = vmatpush1.bf16.msra.mxu0 %v1780_v62  ;;  %v379_v62 = vld [vmem:[%s2329_s2] sm:$0x7] }
  0x71   : > { %975 = vmatprep.subr.bf16.mxu0 %v1787_v63  ;;  %1088 = vmatmul.mubr.bf16.vlgmr.msra.gmra.mrb[4].mxu1 %v1853_v17  ;;  %v391_v61 = vsub.s32 2, %v382_v60  ;;  %v387_v14 = vsub.s32 1, %v382_v60 }
  0x72   : > { %1641 = vmatpush3.bf16.msra.mxu1 %v1857_v18 }
  0x73   : > { %1642 = vmatprep.subr.bf16.mxu1 %v1858_v20  ;;  %v392_v63 = vrot.slane %v379_v62, %v391_v61  ;;  %v388_v16 = vrot.slane %v379_v62, %v387_v14 }
  0x74   : > { %976 = vmatpush1.bf16.msra.mxu0 %v1785_v2 }
  0x75   : > { %977 = vmatprep.subr.bf16.mxu0 %v1792_v3 }
  0x76   : > { %1643 = vmatpush3.bf16.msra.mxu1 %v1859_v22 }
  0x77   : > { %1644 = vmatprep.subr.bf16.mxu1 %v1860_v23 }
  0x78   : > { %978 = vmatpush1.bf16.msra.mxu0 %v1790_v6 }
  0x79   : > { %979 = vmatprep.subr.bf16.mxu0 %v1797_v7 }
  0x7a   : > { %1645 = vmatpush3.bf16.msra.mxu1 %v1861_v26 }
  0x7b   : > { %1646 = vmatprep.subr.bf16.mxu1 %v1862_v27 }
  0x7c   : > { %980 = vmatpush1.bf16.msra.mxu0 %v1795_v11 }
  0x7d   : > { %981 = vmatprep.subr.bf16.mxu0 %v1802_v12 }
  0x7e   : > { %1647 = vmatpush3.bf16.msra.mxu1 %v1863_v30 }
  0x7f   : > { %1648 = vmatprep.subr.bf16.mxu1 %v1864_v44 }
  0x80   : > { %982 = vmatpush1.bf16.msra.mxu0 %v1800_v13  ;;  %v383_v13 = vsub.s32 0, %v382_v60 }
  0x81   : > { %983 = vmatprep.subr.bf16.mxu0 %v1807_v15 }
  0x82   : > { %1649 = vmatpush3.bf16.msra.mxu1 %v1865_v45  ;;  %v384_v15 = vrot.slane %v379_v62, %v383_v13  ;;  %v1568_v45 = vld [vmem:[%s2331_s4] ss:$0 sm:$0xff] }
  0x83   : > { %1650 = vmatprep.subr.bf16.mxu1 %v1866_v46 }
  0x84   : > { %984 = vmatpush1.bf16.msra.mxu0 %v1805_v19 }
  0x85   : > { %985 = vmatprep.subr.bf16.mxu0 %v1812_v21 }
  0x86   : > { %1651 = vmatpush3.bf16.msra.mxu1 %v1867_v47 }
  0x87   : > { %1652 = vmatprep.subr.bf16.mxu1 %v1868_v48 }
  0x88   : > { %986 = vmatpush1.bf16.msra.mxu0 %v1810_v24 }
  0x89   : > { %987 = vmatprep.subr.bf16.mxu0 %v1817_v25 }
  0x8a   : > { %1653 = vmatpush3.bf16.msra.mxu1 %v1869_v49 }
  0x8b   : > { %1654 = vmatprep.subr.bf16.mxu1 %v1870_v50 }
  0x8c   : > { %988 = vmatpush1.bf16.msra.mxu0 %v1815_v28 }
  0x8d   : > { %989 = vmatprep.subr.bf16.mxu0 %v1822_v29 }
  0x8e   : > { %1655 = vmatpush3.bf16.msra.mxu1 %v1871_v51 }
  0x8f   : > { %1671 = vmatprep.subr.bf16.mxu1 %v1923_v52 }
  0x90   : > { %990 = vmatpush1.bf16.msra.mxu0 %v1820_v31  ;;  %v1872_v31 = vld [vmem:[#allocation2 + $0x80] sm:$0xff]  }
  0x91   : > { %991 = vmatprep.subr.bf16.mxu0 %v1827_v32  ;;  %v1873_v32 = vld [vmem:[#allocation2 + $0x88] sm:$0xff]  }
  0x94   : > { %992 = vmatpush1.bf16.msra.mxu0 %v1825_v33  ;;  %v1874_v33 = vld [vmem:[#allocation2 + $0x90] sm:$0xff]  }
  0x95   : > { %993 = vmatprep.subr.bf16.mxu0 %v1832_v34  ;;  %v1875_v34 = vld [vmem:[#allocation2 + $0x98] sm:$0xff]  }
  0x98   : > { %994 = vmatpush1.bf16.msra.mxu0 %v1830_v35  ;;  %v1876_v35 = vld [vmem:[#allocation2 + $0xa0] sm:$0xff]  }
  0x99   : > { %995 = vmatprep.subr.bf16.mxu0 %v1837_v36  ;;  %v1877_v36 = vld [vmem:[#allocation2 + $0xa8] sm:$0xff]  }
  0x9c   : > { %996 = vmatpush1.bf16.msra.mxu0 %v1835_v37  ;;  %v1878_v37 = vld [vmem:[#allocation2 + $0xb0] sm:$0xff]  }
  0x9d   : > { %997 = vmatprep.subr.bf16.mxu0 %v1842_v38  ;;  %v1879_v38 = vld [vmem:[#allocation2 + $0xb8] sm:$0xff]  }
  0xa0   : > { %998 = vmatpush1.bf16.msra.mxu0 %v1840_v39 }
  0xa1   : > { %999 = vmatprep.subr.bf16.mxu0 %v1847_v40 }
  0xa4   : > { %1000 = vmatpush1.bf16.msra.mxu0 %v1845_v41 }
  0xa5   : > { %1001 = vmatprep.subr.bf16.mxu0 %v1852_v42 }
  0xa8   : > { %1002 = vmatpush1.bf16.msra.mxu0 %v1850_v43 }
  0xab   : > { %1004 = vmatmul.mubr.bf16.vlgmr.msra.gmra.mrb[0].mxu0 %v1853_v17 }
 0x124   : > { %v1612_v53 = vpop.f32.mrb[0].mxu1 }
 0x125   : > { %v1613_v54 = vpop.f32.mrb[1].mxu1 }
 0x126   : > { %v1614_v55 = vadd.f32 %v1613_v54, %v1612_v53  ;;  %v1615_v56 = vpop.f32.mrb[2].mxu1 }
 0x127   : > { %v1616_v57 = vpop.f32.mrb[3].mxu1 }
 0x128   : > { %v1617_v58 = vadd.f32 %v1616_v57, %v1615_v56  ;;  %v1049_v0 = vadd.f32 %v1614_v55, %v392_v63 }
 0x12a   : > { %v1052_v3 = vadd.f32 %v1617_v58, %v392_v63 }
 0x144   : > { %v1634_v1 = vpop.f32.mrb[4].mxu1 }
 0x145   : > { %v1635_v2 = vpop.f32.mrb[5].mxu1 }
 0x146   : > { %v1636_v4 = vadd.f32 %v1635_v2, %v1634_v1  ;;  %v1637_v5 = vpop.f32.mrb[6].mxu1 }
 0x147   : > { %v1638_v6 = vpop.f32.mrb[7].mxu1 }
 0x148   : > { %v1090_v7 = vadd.f32 %v1636_v4, %v1049_v0  ;;  %v1639_v8 = vadd.f32 %v1638_v6, %v1637_v5 }
 0x14a   : > { %v1098_v9 = vmax.f32 %v1090_v7, 0.0  ;;  %v1093_v10 = vadd.f32 %v1639_v8, %v1052_v3 }
 0x14c   : > { %v1101_v11 = vmax.f32 %v1093_v10, 0.0 }
 0x14e   : > { %v1104_v12 = vpack.c.bf16 %v1101_v11, %v1098_v9 }
 0x17e   : > { %v1005_v17 = vpop.f32.mrb[0].mxu0 }
 0x17f   : > { %v1691_v18 = vadd.f32 %v1005_v17, %v384_v15  ;;  %v1007_v19 = vpop.f32.mrb[1].mxu0 }
 0x180   : > { %v1692_v20 = vadd.f32 %v1007_v19, %v388_v16  ;;  %v1009_v21 = vpop.f32.mrb[2].mxu0 }
 0x181   : > { %v1693_v22 = vadd.f32 %v1009_v21, %v384_v15  ;;  %v1011_v23 = vpop.f32.mrb[3].mxu0  ;;  %v1096_v25 = vmax.f32 %v1691_v18, 0.0 }
 0x182   : > { %v1694_v24 = vadd.f32 %v1011_v23, %v388_v16  ;;  %v1097_v27 = vmax.f32 %v1692_v20, 0.0 }
 0x183   : > { %v1099_v26 = vmax.f32 %v1693_v22, 0.0 }
 0x184   : > { %v1100_v28 = vmax.f32 %v1694_v24, 0.0 }
 0x185   : > { %v1102_v29 = vpack.c.bf16 %v1099_v26, %v1096_v25 }
 0x186   : > { %v1103_v30 = vpack.c.bf16 %v1100_v28, %v1097_v27 }
 0x188   : > { %1336 = vmatprep.mubr.bf16.mxu1 %v1103_v30 }
 0x189   : > { %1337 = vmatmul.mubr.bf16.vlgmr.msra.gmra.mrb[8].mxu1 %v1102_v29 }
 0x18a   : > { %1672 = vmatpush3.bf16.msra.mxu1 %v1872_v31  ;;  %1687 = vmatprep.mubr.msk.bf16.mxu1 %vm1924_vm0, %v1923_v52 }
 0x18b   : > { %1673 = vmatprep.subr.bf16.mxu1 %v1923_v52 }
 0x18e   : > { %1674 = vmatpush3.bf16.msra.mxu1 %v1873_v32 }
 0x18f   : > { %1675 = vmatprep.subr.bf16.mxu1 %v1923_v52 }
 0x192   : > { %1676 = vmatpush3.bf16.msra.mxu1 %v1874_v33 }
 0x193   : > { %1677 = vmatprep.subr.bf16.mxu1 %v1923_v52 }
 0x196   : > { %1678 = vmatpush3.bf16.msra.mxu1 %v1875_v34 }
 0x197   : > { %1679 = vmatprep.subr.bf16.mxu1 %v1923_v52 }
 0x19a   : > { %1680 = vmatpush3.bf16.msra.mxu1 %v1876_v35 }
 0x19b   : > { %1681 = vmatprep.subr.bf16.mxu1 %v1923_v52 }
 0x19e   : > { %1682 = vmatpush3.bf16.msra.mxu1 %v1877_v36 }
 0x19f   : > { %1683 = vmatprep.subr.bf16.mxu1 %v1923_v52 }
 0x1a2   : > { %1684 = vmatpush3.bf16.msra.mxu1 %v1878_v37 }
 0x1a3   : > { %1685 = vmatprep.subr.bf16.mxu1 %v1923_v52 }
 0x1a6   : > { %1686 = vmatpush3.bf16.msra.mxu1 %v1879_v38 }
 0x1a9   : > { %1688 = vmatmul.mubr.bf16.vlgmr.msra.gmra.mrb[12].mxu1 %v1104_v12 }
 0x25c   : > { %v1656_v39 = vpop.f32.mrb[8].mxu1 }
 0x25d   : > { %v1657_v40 = vpop.f32.mrb[9].mxu1 }
 0x25e   : > { %v1658_v41 = vadd.f32 %v1657_v40, %v1656_v39  ;;  %v1659_v42 = vpop.f32.mrb[10].mxu1 }
 0x25f   : > { %v1660_v43 = vpop.f32.mrb[11].mxu1 }
 0x260   : > { %v1661_v44 = vadd.f32 %v1660_v43, %v1659_v42  ;;  %v1339_v46 = vadd.f32 %v1658_v41, %v1568_v45 }
 0x262   : > { %v1342_v50 = vadd.f32 %v1661_v44, %v1568_v45 }
 0x27c   : > { %v1379_v47 = vpop.f32.mrb[12].mxu1 }
 0x27d   : > { %v1380_v48 = vadd.f32 %v1379_v47, %v1339_v46  ;;  %v1689_v49 = vpop.f32.mrb[13].mxu1 }
 0x27e   : > { %v1382_v51 = vpop.f32.mrb[14].mxu1 }
 0x27f   : > { %1386 = vst [vmem:[%s244_s13] sm:$0xff] %v1380_v48  ;;  %v1383_v52 = vadd.f32 %v1382_v51, %v1342_v50  ;;  %v1690_v53 = vpop.f32.mrb[15].mxu1 }
 0x281   : > { %1387 = vst [vmem:[%s244_s13 + $0x8] sm:$0xff] %v1383_v52 }
 0x282 PF: > { %s16_s18 = sadd.s32 1, %s1918_s18  }
 0x283   : > { %p13_p3 = scmp.ge.s32.totalorder %s16_s18, 4  }
 0x285   :  { %15 = sbr.rel (!%p13_p3) target bundleno = 1 (0x1), region = 75 }
 0x28c   :  { %1410 = vsyncpa [#allocation3], 1 }
 0x28d   :  { %1412 = vsyncpa [#allocation3 + $0x1], 1 }

</bundles_post_ra>
